<compile_context>
chip_gen: v5e
topology: v5e:2x2
jax: 0.10.0
libtpu: 0.0.40
codegen_flags: <defaults>
</compile_context>

<pallas_src>
import jax
import jax.numpy as jnp
from jax.experimental import pallas as pl
from jax.experimental.pallas import tpu as pltpu


def _round_up(x, m):
    return ((x + m - 1) // m) * m


def _make_kernel(S, H, W):
    HW = H * W

    def kernel(*refs):
        # refs = (gt, dx_mask, dy_mask, pred_0..pred_{S-1}, sq_out, gr_out)
        gt_ref, dxm_ref, dym_ref = refs[0], refs[1], refs[2]
        pred_refs = refs[3:3 + S]
        sq_ref, gr_ref = refs[3 + S], refs[4 + S]

        gt = gt_ref[...].astype(jnp.float32)       # (TN, HW)
        dx_mask = dxm_ref[...]                     # (1, HW), resident across grid
        dy_mask = dym_ref[...]                     # (1, HW)

        lane_s = jax.lax.broadcasted_iota(jnp.int32, (1, S), 1)
        sq_out = jnp.zeros((1, S), jnp.float32)
        gr_out = jnp.zeros((1, S), jnp.float32)

        for s in range(S):                          # S is a small static constant
            pred = pred_refs[s][...].astype(jnp.float32)
            diff = gt - pred

            # --- MSE numerator: sum over the whole tile ---
            sq = jnp.sum(jnp.sum(diff * diff, axis=1, keepdims=True),
                         axis=0, keepdims=True)                       # (1, 1)

            # --- image-gradient L1 numerator ---
            # Gradients are linear: d(gt) - d(pred) == d(diff). In the
            # flattened row-major layout, "next column" is lane k+1 and
            # "next row" is lane k+W; circular rolls + boundary masks
            # reproduce the zero-padded last row/col of image_gradients.
            nxt = pltpu.roll(diff, shift=HW - 1, axis=1)     # diff[:, (k+1) % HW]
            below = pltpu.roll(diff, shift=HW - W, axis=1)   # diff[:, (k+W) % HW]
            grad_abs = (jnp.abs(nxt - diff) * dx_mask
                        + jnp.abs(below - diff) * dy_mask)
            gr = jnp.sum(jnp.sum(grad_abs, axis=1, keepdims=True),
                         axis=0, keepdims=True)                       # (1, 1)

            onehot = (lane_s == s).astype(jnp.float32)        # (1, S)
            sq_out = sq_out + onehot * sq
            gr_out = gr_out + onehot * gr

        sq_ref[...] = sq_out.reshape(1, 1, S)
        gr_ref[...] = gr_out.reshape(1, 1, S)

    return kernel


def deconv_loss(x_gt, outputs, tau=1.0, vmem_budget_bytes=12 * 1024 * 1024):
    """x_gt: (B, C, H, W); outputs: list of S arrays of shape (B, C, H, W)."""
    S = len(outputs)
    B, C, H, W = x_gt.shape
    N = B * C
    HW = H * W

    # --- tile sizing: TN images per grid step, lane-dense HW on the last dim.
    # (1 + S) double-buffered f32 input tiles must fit a conservative VMEM
    # budget that is safe on v5e (16 MiB scoped default) and v7x (64 MiB phys).
    bytes_per_row = HW * 4
    tn_cap = vmem_budget_bytes // (2 * (1 + S) * bytes_per_row)
    tn_cap = max(8, (tn_cap // 8) * 8)
    tn = min(tn_cap, _round_up(N, 8))
    n_pad = _round_up(N, tn)
    n_tiles = n_pad // tn

    def prep(x):
        # NCHW is contiguous -> this reshape is free; zero-padded rows give
        # diff == 0 and contribute nothing to either sum.
        x2 = x.reshape(N, HW).astype(jnp.float32)
        if n_pad != N:
            x2 = jnp.pad(x2, ((0, n_pad - N), (0, 0)))
        return x2

    gt2 = prep(x_gt)
    preds = [prep(o) for o in outputs]           # no jnp.stack copy

    # Boundary masks for the flattened-layout forward differences.
    lane = jnp.arange(HW, dtype=jnp.int32).reshape(1, HW)
    dx_mask = ((lane % W) < (W - 1)).astype(jnp.float32)   # drop last column
    dy_mask = (lane < (H - 1) * W).astype(jnp.float32)     # drop last row

    tile_spec = pl.BlockSpec((tn, HW), lambda n: (n, 0))
    mask_spec = pl.BlockSpec((1, HW), lambda n: (0, 0))    # resident across grid
    out_spec = pl.BlockSpec((1, 1, S), lambda n: (n, 0, 0))

    sq, gr = pl.pallas_call(
        _make_kernel(S, H, W),
        out_shape=(
            jax.ShapeDtypeStruct((n_tiles, 1, S), jnp.float32),
            jax.ShapeDtypeStruct((n_tiles, 1, S), jnp.float32),
        ),
        grid_spec=pltpu.PrefetchScalarGridSpec(
            num_scalar_prefetch=0,
            grid=(n_tiles,),
            in_specs=[tile_spec, mask_spec, mask_spec] + [tile_spec] * S,
            out_specs=[out_spec, out_spec],
        ),
        compiler_params=pltpu.CompilerParams(
            dimension_semantics=("parallel",)),   # shard image tiles across TCs (v7x)
    )(gt2, dx_mask, dy_mask, *preds)

    sq_per_step = jnp.sum(sq.reshape(n_tiles, S), axis=0)   # (S,)
    gr_per_step = jnp.sum(gr.reshape(n_tiles, S), axis=0)   # (S,)

    mse_per_step = sq_per_step / (N * HW)     # MSELoss().forward -> global mean
    grad_per_step = gr_per_step / N           # GradLoss().forward -> mean over (B, C)

    weights = jnp.arange(1, S + 1, dtype=jnp.float32)       # i = 1..S
    loss = jnp.sum(weights * (mse_per_step + tau * grad_per_step)) / S
    return loss


# ---------- pure-JAX reference (mirrors the PyTorch module) ----------
def _image_gradients_ref(x):
    dy = x[:, :, 1:, :] - x[:, :, :-1, :]
    dx = x[:, :, :, 1:] - x[:, :, :, :-1]
    dy = jnp.pad(dy, ((0, 0), (0, 0), (0, 1), (0, 0)))
    dx = jnp.pad(dx, ((0, 0), (0, 0), (0, 0), (0, 1)))
    return dy, dx


def _deconv_loss_ref(x_gt, outputs, tau=1.0):
    S = len(outputs)
    loss = 0.0
    for i in range(1, S + 1):
        out = outputs[i - 1]
        mse = jnp.mean((x_gt - out) ** 2)
        dy_gt, dx_gt = _image_gradients_ref(x_gt)
        dy_o, dx_o = _image_gradients_ref(out)
        norm_y = jnp.sum(jnp.abs(dy_gt - dy_o), axis=(2, 3))
        norm_x = jnp.sum(jnp.abs(dx_gt - dx_o), axis=(2, 3))
        grad = jnp.mean(norm_y + norm_x)
        loss += i * (mse + tau * grad)
    return loss / S


if __name__ == "__main__":
    key = jax.random.PRNGKey(0)
    B, C, H, W = 2, 4, 16, 16
    S = 3  # number of deconvolution steps

    k_gt, *k_outs = jax.random.split(key, S + 1)
    x_gt = jax.random.normal(k_gt, (B, C, H, W), dtype=jnp.float32)
    outputs = [jax.random.normal(k, (B, C, H, W), dtype=jnp.float32) for k in k_outs]

    loss = deconv_loss(x_gt, outputs, tau=1.0)
    loss = jax.block_until_ready(loss)

    ref = _deconv_loss_ref(x_gt, outputs, tau=1.0)
    assert jnp.allclose(loss, ref, rtol=1e-4, atol=1e-4), (loss, ref)

    print("KERNEL_OK")
</pallas_src>

<mosaic_0001>
module attributes {stable_mosaic.version = 11 : i64} {
  func.func @kernel(%arg0: i32, %arg1: memref<8x256xf32, #tpu.memory_space<vmem>>, %arg2: memref<1x256xf32, #tpu.memory_space<vmem>>, %arg3: memref<1x256xf32, #tpu.memory_space<vmem>>, %arg4: memref<8x256xf32, #tpu.memory_space<vmem>>, %arg5: memref<8x256xf32, #tpu.memory_space<vmem>>, %arg6: memref<8x256xf32, #tpu.memory_space<vmem>>, %arg7: memref<1x1x3xf32, #tpu.memory_space<vmem>>, %arg8: memref<1x1x3xf32, #tpu.memory_space<vmem>>) attributes {dimension_semantics = [#tpu.dimension_semantics<parallel>], iteration_bounds = array<i64: 1>, scalar_prefetch = 0 : i64, scratch_operands = 0 : i64, tpu.core_type = #tpu.core_type<tc>, window_params = [{transform_indices = @transform_0, window_bounds = array<i64: 8, 256>}, {pipeline_mode = #tpu.pipeline_mode<synchronous>, transform_indices = @transform_1, window_bounds = array<i64: 1, 256>}, {pipeline_mode = #tpu.pipeline_mode<synchronous>, transform_indices = @transform_2, window_bounds = array<i64: 1, 256>}, {transform_indices = @transform_3, window_bounds = array<i64: 8, 256>}, {transform_indices = @transform_4, window_bounds = array<i64: 8, 256>}, {transform_indices = @transform_5, window_bounds = array<i64: 8, 256>}, {transform_indices = @transform_6, window_bounds = array<i64: 1, 1, 3>}, {transform_indices = @transform_7, window_bounds = array<i64: 1, 1, 3>}]} {
    %c0 = arith.constant 0 : index
    %c0_0 = arith.constant 0 : index
    %0 = vector.load %arg1[%c0, %c0_0] : memref<8x256xf32, #tpu.memory_space<vmem>>, vector<8x256xf32>
    %c0_1 = arith.constant 0 : index
    %c0_2 = arith.constant 0 : index
    %1 = vector.load %arg2[%c0_1, %c0_2] : memref<1x256xf32, #tpu.memory_space<vmem>>, vector<1x256xf32>
    %c0_3 = arith.constant 0 : index
    %c0_4 = arith.constant 0 : index
    %2 = vector.load %arg3[%c0_3, %c0_4] : memref<1x256xf32, #tpu.memory_space<vmem>>, vector<1x256xf32>
    %3 = tpu.iota {dimensions = array<i32: 1>} : vector<1x3xi32>
    %cst = arith.constant 0.000000e+00 : f32
    %4 = vector.broadcast %cst : f32 to vector<1x3xf32>
    %cst_5 = arith.constant 0.000000e+00 : f32
    %5 = vector.broadcast %cst_5 : f32 to vector<1x3xf32>
    %c0_6 = arith.constant 0 : index
    %c0_7 = arith.constant 0 : index
    %6 = vector.load %arg4[%c0_6, %c0_7] : memref<8x256xf32, #tpu.memory_space<vmem>>, vector<8x256xf32>
    %7 = arith.subf %0, %6 : vector<8x256xf32>
    %8 = arith.mulf %7, %7 : vector<8x256xf32>
    %cst_8 = arith.constant dense<0.000000e+00> : vector<8xf32>
    %9 = vector.multi_reduction <add>, %8, %cst_8 [1] : vector<8x256xf32> to vector<8xf32>
    %10 = vector.shape_cast %9 : vector<8xf32> to vector<8x1xf32>
    %cst_9 = arith.constant dense<0.000000e+00> : vector<1xf32>
    %11 = vector.multi_reduction <add>, %10, %cst_9 [0] : vector<8x1xf32> to vector<1xf32>
    %12 = vector.shape_cast %11 : vector<1xf32> to vector<1x1xf32>
    %c255_i32 = arith.constant 255 : i32
    %13 = tpu.dynamic_rotate %7 by %c255_i32 dim 1 : vector<8x256xf32>, i32 -> vector<8x256xf32>
    %c240_i32 = arith.constant 240 : i32
    %14 = tpu.dynamic_rotate %7 by %c240_i32 dim 1 : vector<8x256xf32>, i32 -> vector<8x256xf32>
    %15 = arith.subf %13, %7 : vector<8x256xf32>
    %16 = math.absf %15 : vector<8x256xf32>
    %17 = vector.broadcast %1 : vector<1x256xf32> to vector<8x256xf32>
    %18 = arith.mulf %16, %17 : vector<8x256xf32>
    %19 = arith.subf %14, %7 : vector<8x256xf32>
    %20 = math.absf %19 : vector<8x256xf32>
    %21 = vector.broadcast %2 : vector<1x256xf32> to vector<8x256xf32>
    %22 = arith.mulf %20, %21 : vector<8x256xf32>
    %23 = arith.addf %18, %22 : vector<8x256xf32>
    %cst_10 = arith.constant dense<0.000000e+00> : vector<8xf32>
    %24 = vector.multi_reduction <add>, %23, %cst_10 [1] : vector<8x256xf32> to vector<8xf32>
    %25 = vector.shape_cast %24 : vector<8xf32> to vector<8x1xf32>
    %cst_11 = arith.constant dense<0.000000e+00> : vector<1xf32>
    %26 = vector.multi_reduction <add>, %25, %cst_11 [0] : vector<8x1xf32> to vector<1xf32>
    %27 = vector.shape_cast %26 : vector<1xf32> to vector<1x1xf32>
    %c0_i32 = arith.constant 0 : i32
    %28 = vector.broadcast %c0_i32 : i32 to vector<1x3xi32>
    %29 = arith.cmpi eq, %3, %28 : vector<1x3xi32>
    %30 = arith.extui %29 : vector<1x3xi1> to vector<1x3xi32>
    %31 = arith.sitofp %30 : vector<1x3xi32> to vector<1x3xf32>
    %32 = vector.broadcast %12 : vector<1x1xf32> to vector<1x3xf32>
    %33 = arith.mulf %31, %32 : vector<1x3xf32>
    %34 = arith.addf %4, %33 : vector<1x3xf32>
    %35 = vector.broadcast %27 : vector<1x1xf32> to vector<1x3xf32>
    %36 = arith.mulf %31, %35 : vector<1x3xf32>
    %37 = arith.addf %5, %36 : vector<1x3xf32>
    %c0_12 = arith.constant 0 : index
    %c0_13 = arith.constant 0 : index
    %38 = vector.load %arg5[%c0_12, %c0_13] : memref<8x256xf32, #tpu.memory_space<vmem>>, vector<8x256xf32>
    %39 = arith.subf %0, %38 : vector<8x256xf32>
    %40 = arith.mulf %39, %39 : vector<8x256xf32>
    %cst_14 = arith.constant dense<0.000000e+00> : vector<8xf32>
    %41 = vector.multi_reduction <add>, %40, %cst_14 [1] : vector<8x256xf32> to vector<8xf32>
    %42 = vector.shape_cast %41 : vector<8xf32> to vector<8x1xf32>
    %cst_15 = arith.constant dense<0.000000e+00> : vector<1xf32>
    %43 = vector.multi_reduction <add>, %42, %cst_15 [0] : vector<8x1xf32> to vector<1xf32>
    %44 = vector.shape_cast %43 : vector<1xf32> to vector<1x1xf32>
    %c255_i32_16 = arith.constant 255 : i32
    %45 = tpu.dynamic_rotate %39 by %c255_i32_16 dim 1 : vector<8x256xf32>, i32 -> vector<8x256xf32>
    %c240_i32_17 = arith.constant 240 : i32
    %46 = tpu.dynamic_rotate %39 by %c240_i32_17 dim 1 : vector<8x256xf32>, i32 -> vector<8x256xf32>
    %47 = arith.subf %45, %39 : vector<8x256xf32>
    %48 = math.absf %47 : vector<8x256xf32>
    %49 = vector.broadcast %1 : vector<1x256xf32> to vector<8x256xf32>
    %50 = arith.mulf %48, %49 : vector<8x256xf32>
    %51 = arith.subf %46, %39 : vector<8x256xf32>
    %52 = math.absf %51 : vector<8x256xf32>
    %53 = vector.broadcast %2 : vector<1x256xf32> to vector<8x256xf32>
    %54 = arith.mulf %52, %53 : vector<8x256xf32>
    %55 = arith.addf %50, %54 : vector<8x256xf32>
    %cst_18 = arith.constant dense<0.000000e+00> : vector<8xf32>
    %56 = vector.multi_reduction <add>, %55, %cst_18 [1] : vector<8x256xf32> to vector<8xf32>
    %57 = vector.shape_cast %56 : vector<8xf32> to vector<8x1xf32>
    %cst_19 = arith.constant dense<0.000000e+00> : vector<1xf32>
    %58 = vector.multi_reduction <add>, %57, %cst_19 [0] : vector<8x1xf32> to vector<1xf32>
    %59 = vector.shape_cast %58 : vector<1xf32> to vector<1x1xf32>
    %c1_i32 = arith.constant 1 : i32
    %60 = vector.broadcast %c1_i32 : i32 to vector<1x3xi32>
    %61 = arith.cmpi eq, %3, %60 : vector<1x3xi32>
    %62 = arith.extui %61 : vector<1x3xi1> to vector<1x3xi32>
    %63 = arith.sitofp %62 : vector<1x3xi32> to vector<1x3xf32>
    %64 = vector.broadcast %44 : vector<1x1xf32> to vector<1x3xf32>
    %65 = arith.mulf %63, %64 : vector<1x3xf32>
    %66 = arith.addf %34, %65 : vector<1x3xf32>
    %67 = vector.broadcast %59 : vector<1x1xf32> to vector<1x3xf32>
    %68 = arith.mulf %63, %67 : vector<1x3xf32>
    %69 = arith.addf %37, %68 : vector<1x3xf32>
    %c0_20 = arith.constant 0 : index
    %c0_21 = arith.constant 0 : index
    %70 = vector.load %arg6[%c0_20, %c0_21] : memref<8x256xf32, #tpu.memory_space<vmem>>, vector<8x256xf32>
    %71 = arith.subf %0, %70 : vector<8x256xf32>
    %72 = arith.mulf %71, %71 : vector<8x256xf32>
    %cst_22 = arith.constant dense<0.000000e+00> : vector<8xf32>
    %73 = vector.multi_reduction <add>, %72, %cst_22 [1] : vector<8x256xf32> to vector<8xf32>
    %74 = vector.shape_cast %73 : vector<8xf32> to vector<8x1xf32>
    %cst_23 = arith.constant dense<0.000000e+00> : vector<1xf32>
    %75 = vector.multi_reduction <add>, %74, %cst_23 [0] : vector<8x1xf32> to vector<1xf32>
    %76 = vector.shape_cast %75 : vector<1xf32> to vector<1x1xf32>
    %c255_i32_24 = arith.constant 255 : i32
    %77 = tpu.dynamic_rotate %71 by %c255_i32_24 dim 1 : vector<8x256xf32>, i32 -> vector<8x256xf32>
    %c240_i32_25 = arith.constant 240 : i32
    %78 = tpu.dynamic_rotate %71 by %c240_i32_25 dim 1 : vector<8x256xf32>, i32 -> vector<8x256xf32>
    %79 = arith.subf %77, %71 : vector<8x256xf32>
    %80 = math.absf %79 : vector<8x256xf32>
    %81 = vector.broadcast %1 : vector<1x256xf32> to vector<8x256xf32>
    %82 = arith.mulf %80, %81 : vector<8x256xf32>
    %83 = arith.subf %78, %71 : vector<8x256xf32>
    %84 = math.absf %83 : vector<8x256xf32>
    %85 = vector.broadcast %2 : vector<1x256xf32> to vector<8x256xf32>
    %86 = arith.mulf %84, %85 : vector<8x256xf32>
    %87 = arith.addf %82, %86 : vector<8x256xf32>
    %cst_26 = arith.constant dense<0.000000e+00> : vector<8xf32>
    %88 = vector.multi_reduction <add>, %87, %cst_26 [1] : vector<8x256xf32> to vector<8xf32>
    %89 = vector.shape_cast %88 : vector<8xf32> to vector<8x1xf32>
    %cst_27 = arith.constant dense<0.000000e+00> : vector<1xf32>
    %90 = vector.multi_reduction <add>, %89, %cst_27 [0] : vector<8x1xf32> to vector<1xf32>
    %91 = vector.shape_cast %90 : vector<1xf32> to vector<1x1xf32>
    %c2_i32 = arith.constant 2 : i32
    %92 = vector.broadcast %c2_i32 : i32 to vector<1x3xi32>
    %93 = arith.cmpi eq, %3, %92 : vector<1x3xi32>
    %94 = arith.extui %93 : vector<1x3xi1> to vector<1x3xi32>
    %95 = arith.sitofp %94 : vector<1x3xi32> to vector<1x3xf32>
    %96 = vector.broadcast %76 : vector<1x1xf32> to vector<1x3xf32>
    %97 = arith.mulf %95, %96 : vector<1x3xf32>
    %98 = arith.addf %66, %97 : vector<1x3xf32>
    %99 = vector.broadcast %91 : vector<1x1xf32> to vector<1x3xf32>
    %100 = arith.mulf %95, %99 : vector<1x3xf32>
    %101 = arith.addf %69, %100 : vector<1x3xf32>
    %102 = vector.shape_cast %98 : vector<1x3xf32> to vector<1x1x3xf32>
    %c0_28 = arith.constant 0 : index
    %c0_29 = arith.constant 0 : index
    %c0_30 = arith.constant 0 : index
    %103 = vector.load %arg7[%c0_28, %c0_29, %c0_30] : memref<1x1x3xf32, #tpu.memory_space<vmem>>, vector<1x1x3xf32>
    tpu.vector_store %arg7[%c0_28, %c0_29, %c0_30], %102 {strides = array<i32>} : memref<1x1x3xf32, #tpu.memory_space<vmem>>, vector<1x1x3xf32>,
    %104 = vector.shape_cast %101 : vector<1x3xf32> to vector<1x1x3xf32>
    %c0_31 = arith.constant 0 : index
    %c0_32 = arith.constant 0 : index
    %c0_33 = arith.constant 0 : index
    %105 = vector.load %arg8[%c0_31, %c0_32, %c0_33] : memref<1x1x3xf32, #tpu.memory_space<vmem>>, vector<1x1x3xf32>
    tpu.vector_store %arg8[%c0_31, %c0_32, %c0_33], %104 {strides = array<i32>} : memref<1x1x3xf32, #tpu.memory_space<vmem>>, vector<1x1x3xf32>,
    return
  }
  func.func @transform_0(%arg0: i32) -> (i32, i32) {
    %c0_i32 = arith.constant 0 : i32
    %c0_i32_0 = arith.constant 0 : i32
    return %arg0, %c0_i32 : i32, i32
  }
  func.func @transform_1(%arg0: i32) -> (i32, i32) {
    %c0_i32 = arith.constant 0 : i32
    %c0_i32_0 = arith.constant 0 : i32
    %c0_i32_1 = arith.constant 0 : i32
    return %c0_i32, %c0_i32_0 : i32, i32
  }
  func.func @transform_2(%arg0: i32) -> (i32, i32) {
    %c0_i32 = arith.constant 0 : i32
    %c0_i32_0 = arith.constant 0 : i32
    %c0_i32_1 = arith.constant 0 : i32
    return %c0_i32, %c0_i32_0 : i32, i32
  }
  func.func @transform_3(%arg0: i32) -> (i32, i32) {
    %c0_i32 = arith.constant 0 : i32
    %c0_i32_0 = arith.constant 0 : i32
    return %arg0, %c0_i32 : i32, i32
  }
  func.func @transform_4(%arg0: i32) -> (i32, i32) {
    %c0_i32 = arith.constant 0 : i32
    %c0_i32_0 = arith.constant 0 : i32
    return %arg0, %c0_i32 : i32, i32
  }
  func.func @transform_5(%arg0: i32) -> (i32, i32) {
    %c0_i32 = arith.constant 0 : i32
    %c0_i32_0 = arith.constant 0 : i32
    return %arg0, %c0_i32 : i32, i32
  }
  func.func @transform_6(%arg0: i32) -> (i32, i32, i32) {
    %c0_i32 = arith.constant 0 : i32
    %c0_i32_0 = arith.constant 0 : i32
    %c0_i32_1 = arith.constant 0 : i32
    return %arg0, %c0_i32, %c0_i32_0 : i32, i32, i32
  }
  func.func @transform_7(%arg0: i32) -> (i32, i32, i32) {
    %c0_i32 = arith.constant 0 : i32
    %c0_i32_0 = arith.constant 0 : i32
    %c0_i32_1 = arith.constant 0 : i32
    return %arg0, %c0_i32, %c0_i32_0 : i32, i32, i32
  }
}

</mosaic_0001>

<bundles_post_ra>
// kernel: tpu_custom_call.1
= control target key start
LH: loop header
LB: loop body
LE: loop exit
PB: predicated region body
PF: predicated region fallthrough
CT: control target
= control target key end

     0   :  { %13 = vsyncpa [#allocation3], 0  ;;  %s713_s0 = inlined_call_operand.hbm [shape: f32[8,256], index: 0, kind: input, shape index: {}]   ;;  %s714_s1 = inlined_call_operand.hbm [shape: f32[1,256], index: 1, kind: input, shape index: {}]   ;;  %s715_s2 = inlined_call_operand.hbm [shape: f32[1,256], index: 2, kind: input, shape index: {}]   ;;  %s716_s3 = inlined_call_operand.hbm [shape: f32[8,256], index: 3, kind: input, shape index: {}]   ;;  %s717_s4 = inlined_call_operand.hbm [shape: f32[8,256], index: 4, kind: input, shape index: {}]   ;;  %s718_s5 = inlined_call_operand.hbm [shape: f32[8,256], index: 5, kind: input, shape index: {}]   ;;  %s719_s6 = inlined_call_operand.hbm [shape: f32[1,1,3], index: 6, kind: output, shape index: {0}]   ;;  %s720_s7 = inlined_call_operand.hbm [shape: f32[1,1,3], index: 7, kind: output, shape index: {1}]  }
   0x1   :  { %14 = vsyncpa [#allocation6], 0 }
   0x2   :  { %15 = vsyncpa [#allocation9], 0 }
   0x3   :  { %16 = vsyncpa [#allocation12], 0 }
   0x4   :  { %17 = vsyncpa [#allocation4], 0  ;;  %s35_s26 = sshll.u32 %s714_s1, 4  ;;  %s36_s26 = int_to_ptr.hbm [resolvable:$true] %s35_s26 }
   0x5   :  { %18 = vsyncpa [#allocation15], 0  ;;  %s555_s27 = smov [#allocation5]   ;;  %s57_s8 = sshll.u32 %s716_s3, 4  ;;  %s58_s8 = int_to_ptr.hbm [resolvable:$true] %s57_s8 }
   0x6   :  { %s37_s28 = sshll.u32 %s555_s27, 4  ;;  %s556_s9 = smov [#allocation8]   ;;  %s38_s28 = int_to_ptr.vmem [resolvable:$true] %s37_s28 }
   0x7   :  { %40 = dma.hbm_to_vmem [thread:$0]  %s36_s26, 32, %s38_s28, [#allocation6]  }
   0x8   :  { %s59_s10 = sshll.u32 %s556_s9, 4  ;;  %s24_s13 = sshll.u32 %s713_s0, 4  ;;  %s60_s10 = int_to_ptr.vmem [resolvable:$true] %s59_s10  ;;  %s25_s13 = int_to_ptr.hbm [resolvable:$true] %s24_s13 }
   0x9   :  { %62 = dma.hbm_to_vmem [thread:$0]  %s58_s8, 256, %s60_s10, [#allocation9]  }
   0xa   :  { %s46_s15 = sshll.u32 %s715_s2, 4  ;;  %s557_s16 = smov [#allocation2]   ;;  %s47_s15 = int_to_ptr.hbm [resolvable:$true] %s46_s15 }
   0xb   :  { %s26_s17 = sshll.u32 %s557_s16, 4  ;;  %s558_s3 = smov [#allocation7]   ;;  %s27_s17 = int_to_ptr.vmem [resolvable:$true] %s26_s17 }
   0xc   :  { %29 = dma.hbm_to_vmem [thread:$0]  %s25_s13, 256, %s27_s17, [#allocation3]  }
   0xd   :  { %s48_s18 = sshll.u32 %s558_s3, 4  ;;  %s68_s21 = sshll.u32 %s717_s4, 4  ;;  %s49_s18 = int_to_ptr.vmem [resolvable:$true] %s48_s18  ;;  %s69_s21 = int_to_ptr.hbm [resolvable:$true] %s68_s21 }
   0xe   :  { %51 = dma.hbm_to_vmem [thread:$0]  %s47_s15, 32, %s49_s18, [#allocation6]  }
   0xf   :  { %s79_s23 = sshll.u32 %s718_s5, 4  ;;  %s559_s24 = smov [#allocation10]   ;;  %s80_s23 = int_to_ptr.hbm [resolvable:$true] %s79_s23 }
  0x10   :  { %s70_s2 = sshll.u32 %s559_s24, 4  ;;  %s560_s25 = smov [#allocation11]   ;;  %s71_s2 = int_to_ptr.vmem [resolvable:$true] %s70_s2 }
  0x11   :  { %73 = dma.hbm_to_vmem [thread:$0]  %s69_s21, 256, %s71_s2, [#allocation9]  }
  0x12   :  { %s81_s26 = sshll.u32 %s560_s25, 4  ;;  %s82_s26 = int_to_ptr.vmem [resolvable:$true] %s81_s26 }
  0x13   :  { %84 = dma.hbm_to_vmem [thread:$0]  %s80_s23, 256, %s82_s26, [#allocation12]  }
  0x14   :  { %543 = dma.done.wait [#allocation3], 256  }
  0x15   :  { %544 = vsyncadd [#allocation3], 4294967040 }
  0x16   :  { %545 = dma.done.wait [#allocation6], 64  }
  0x17   :  { %546 = vsyncadd [#allocation6], 4294967232 }
  0x18   :  { %547 = dma.done.wait [#allocation9], 512  }
  0x19   :  { %548 = vsyncadd [#allocation9], 4294966784 }
  0x1a   :  { %549 = dma.done.wait [#allocation12], 256  }
  0x1b   :  { %550 = vsyncadd [#allocation12], 4294967040  ;;  %v109_v0 = vld [vmem:[#allocation2] sm:$0xff]  ;;  %v115_v1 = vld [vmem:[#allocation8] sm:$0xff]  ;;  %s561_s4 = smov 112   ;;  %s562_s5 = smov 127   ;;  %v113_v24 = vlaneseq }
  0x1c   :  { %v624_v2 = vsub.f32 %v109_v0, %v115_v1  ;;  %v184_v3 = vld [vmem:[#allocation10] sm:$0xff]  ;;  %v116_v6 = vld [vmem:[#allocation8 + $0x8] sm:$0xff]  ;;  %v185_v8 = vld [vmem:[#allocation10 + $0x8] sm:$0xff]  ;;  %s564_s27 = smov [#allocation13]   ;;  %s308_s8 = sshll.u32 %s719_s6, 4  ;;  %vm298_vm5 = vcmask 16384   ;;  %s309_s8 = int_to_ptr.hbm [resolvable:$true] %s308_s8 }
  0x1d   :  { %v626_v4 = vsub.f32 %v109_v0, %v184_v3  ;;  %v110_v5 = vld [vmem:[#allocation2 + $0x8] sm:$0xff]  ;;  %v241_v10 = vld [vmem:[#allocation11] sm:$0xff]  ;;  %v242_v12 = vld [vmem:[#allocation11 + $0x8] sm:$0xff]  ;;  %v654_v27 = vand.u32 127, %v113_v24  ;;  %s306_s28 = sshll.u32 %s564_s27, 4  ;;  %s565_s6 = smov [#allocation14]   ;;  %s307_s28 = int_to_ptr.vmem [resolvable:$true] %s306_s28 }
  0x1e   :  { %137 = vrot.lane.b32.xlu1 %v624_v2, %s561_s4  ;;  %130 = vrot.lane.b32.xlu0 %v624_v2, %s562_s5  ;;  %v118_v7 = vsub.f32 %v110_v5, %v116_v6  ;;  %v631_v9 = vsub.f32 %v110_v5, %v185_v8  ;;  %v634_v11 = vsub.f32 %v109_v0, %v241_v10  ;;  %v112_v29 = vld [vmem:[#allocation7] sm:$0x3]  ;;  %v111_v30 = vld [vmem:[#allocation5] sm:$0x3]  ;;  %s317_s9 = sshll.u32 %s565_s6, 4  ;;  %s319_s12 = sshll.u32 %s720_s7, 4  ;;  %s318_s9 = int_to_ptr.vmem [resolvable:$true] %s317_s9  ;;  %s320_s12 = int_to_ptr.hbm [resolvable:$true] %s319_s12 }
  0x1f   :  { %199 = vrot.lane.b32.xlu2 %v626_v4, %s562_s5  ;;  %v639_v13 = vsub.f32 %v110_v5, %v242_v12  ;;  %v119_v14 = vmul.f32 %v624_v2, %v624_v2  ;;  %v188_v17 = vmul.f32 %v626_v4, %v626_v4  ;;  %vm134_vm0 = vcmp.lt.s32.totalorder %v654_v27, 127 }
  0x20   :  { %v120_v15 = vmul.f32 %v118_v7, %v118_v7  ;;  %v189_v18 = vmul.f32 %v631_v9, %v631_v9  ;;  %v245_v20 = vmul.f32 %v634_v11, %v634_v11  ;;  %vm141_vm1 = vcmp.lt.s32.totalorder %v654_v27, 112 }
  0x21   :  { %v246_v21 = vmul.f32 %v639_v13, %v639_v13  ;;  %v660_v32 = vperm.slane %v112_v29, 0  ;;  %v662_v33 = vperm.slane %v112_v29, 1  ;;  %v149_v44 = vperm.slane %v111_v30, 0 }
  0x22   :  { %v121_v16 = vadd.f32 %v120_v15, %v119_v14  ;;  %v190_v19 = vadd.f32 %v189_v18, %v188_v17  ;;  %v150_v50 = vperm.slane %v111_v30, 1  ;;  %vm177_vm2 = vcmp.eq.s32.totalorder %v654_v27, 0 }
  0x23   :  { %v247_v22 = vadd.f32 %v246_v21, %v245_v20  ;;  %vm234_vm3 = vcmp.eq.s32.totalorder %v654_v27, 1  ;;  %vm291_vm4 = vcmp.eq.s32.totalorder %v654_v27, 2 }
  0x26   :  { %139 = vrot.lane.b32.xlu1 %v118_v7, %s561_s4  ;;  %132 = vrot.lane.b32.xlu0 %v118_v7, %s562_s5 }
  0x27   :  { %201 = vrot.lane.b32.xlu2 %v631_v9, %s562_s5 }
  0x2e   :  { %207 = vrot.lane.b32.xlu1 %v631_v9, %s561_s4  ;;  %205 = vrot.lane.b32.xlu0 %v626_v4, %s561_s4 }
  0x2f   :  { %256 = vrot.lane.b32.xlu2 %v634_v11, %s562_s5 }
  0x36   :  { %262 = vrot.lane.b32.xlu1 %v634_v11, %s561_s4  ;;  %258 = vrot.lane.b32.xlu0 %v639_v13, %s562_s5 }
  0x37   :  { %264 = vrot.lane.b32.xlu2 %v639_v13, %s561_s4 }
  0x60   :  { %122 = vadd.xlane.f32.xlu0 %v121_v16  ;;  %191 = vadd.xlane.f32.xlu2 %v190_v19 }
  0x68   :  { %248 = vadd.xlane.f32.xlu0 %v247_v22 }
  0x79   :  { %v200_v23 = vpop.permute.xlu2 %199 }
  0x81   :  { %v202_v28 = vpop.permute.xlu2 %201 }
  0x82   :  { %v203_v31 = vsel %vm134_vm0, %v200_v23, %v202_v28  ;;  %v204_v45 = vsel %vm134_vm0, %v202_v28, %v200_v23 }
  0x83   :  { %v211_v51 = vsub.f32 %v203_v31, %v626_v4  ;;  %v212_v53 = vsub.f32 %v204_v45, %v631_v9 }
  0x85   :  { %v213_v0 = vand.u32 2147483647, %v211_v51  ;;  %v214_v1 = vand.u32 2147483647, %v212_v53 }
  0x87   :  { %v215_v8 = vmul.f32 %v213_v0, %v149_v44  ;;  %v216_v10 = vmul.f32 %v214_v1, %v150_v50 }
  0x89   :  { %v257_v49 = vpop.permute.xlu2 %256 }
  0x90   :  { %v138_v25 = vpop.permute.xlu1 %137  ;;  %v131_v26 = vpop.permute.xlu0 %130 }
  0x91   :  { %v265_v15 = vpop.permute.xlu2 %264 }
  0x98   :  { %v140_v34 = vpop.permute.xlu1 %139  ;;  %v133_v35 = vpop.permute.xlu0 %132 }
  0x99   :  { %v142_v36 = vsel %vm141_vm1, %v138_v25, %v140_v34  ;;  %v143_v37 = vsel %vm141_vm1, %v140_v34, %v138_v25  ;;  %v135_v38 = vsel %vm134_vm0, %v131_v26, %v133_v35  ;;  %v136_v39 = vsel %vm134_vm0, %v133_v35, %v131_v26 }
  0x9a   :  { %v155_v40 = vsub.f32 %v142_v36, %v624_v2  ;;  %v156_v41 = vsub.f32 %v143_v37, %v118_v7  ;;  %v144_v42 = vsub.f32 %v135_v38, %v624_v2  ;;  %v145_v43 = vsub.f32 %v136_v39, %v118_v7 }
  0x9c   :  { %v157_v46 = vand.u32 2147483647, %v155_v40  ;;  %v158_v47 = vand.u32 2147483647, %v156_v41  ;;  %v146_v48 = vand.u32 2147483647, %v144_v42 }
  0x9d   :  { %v147_v52 = vand.u32 2147483647, %v145_v43 }
  0x9e   :  { %v164_v54 = vmul.f32 %v660_v32, %v157_v46  ;;  %v165_v55 = vmul.f32 %v662_v33, %v158_v47  ;;  %v153_v56 = vmul.f32 %v149_v44, %v146_v48 }
  0x9f   :  { %v154_v57 = vmul.f32 %v150_v50, %v147_v52  ;;  %v563_v52 = vmov 0.0  }
  0xa0   :  { %v208_v58 = vpop.permute.xlu1 %207  ;;  %v206_v59 = vpop.permute.xlu0 %205  ;;  %v166_v60 = vadd.f32 %v164_v54, %v153_v56  ;;  %v337_v53 = vsel %vm177_vm2, 1.0, %v563_v52 }
  0xa1   :  { %v209_v61 = vsel %vm141_vm1, %v206_v59, %v208_v58  ;;  %v210_v62 = vsel %vm141_vm1, %v208_v58, %v206_v59  ;;  %v167_v63 = vadd.f32 %v165_v55, %v154_v57 }
  0xa2   :  { %v217_v2 = vsub.f32 %v209_v61, %v626_v4  ;;  %v218_v3 = vsub.f32 %v210_v62, %v631_v9  ;;  %v339_v62 = vsel %vm291_vm4, 1.0, %v563_v52 }
  0xa3   :  { %v168_v5 = vadd.f32 %v167_v63, %v166_v60  ;;  %v338_v60 = vsel %vm234_vm3, 1.0, %v563_v52 }
  0xa4   :  { %v219_v6 = vand.u32 2147483647, %v217_v2  ;;  %v220_v7 = vand.u32 2147483647, %v218_v3 }
  0xa5   :  { %169 = vadd.xlane.f32.xlu1 %v168_v5 }
  0xa6   :  { %v221_v12 = vmul.f32 %v219_v6, %v660_v32  ;;  %v222_v14 = vmul.f32 %v220_v7, %v662_v33 }
  0xa8   :  { %v263_v16 = vpop.permute.xlu1 %262  ;;  %v259_v17 = vpop.permute.xlu0 %258  ;;  %v223_v18 = vadd.f32 %v221_v12, %v215_v8  ;;  %v224_v19 = vadd.f32 %v222_v14, %v216_v10 }
  0xa9   :  { %v266_v4 = vsel %vm141_vm1, %v263_v16, %v265_v15  ;;  %v267_v9 = vsel %vm141_vm1, %v265_v15, %v263_v16  ;;  %v260_v20 = vsel %vm134_vm0, %v257_v49, %v259_v17  ;;  %v261_v21 = vsel %vm134_vm0, %v259_v17, %v257_v49 }
  0xaa   :  { %v274_v22 = vsub.f32 %v266_v4, %v634_v11  ;;  %v275_v23 = vsub.f32 %v267_v9, %v639_v13  ;;  %v268_v24 = vsub.f32 %v260_v20, %v634_v11  ;;  %v269_v25 = vsub.f32 %v261_v21, %v639_v13 }
  0xab   :  { %v225_v26 = vadd.f32 %v224_v19, %v223_v18 }
  0xac   :  { %v276_v28 = vand.u32 2147483647, %v274_v22  ;;  %v277_v29 = vand.u32 2147483647, %v275_v23  ;;  %v270_v30 = vand.u32 2147483647, %v268_v24 }
  0xad   :  { %v271_v31 = vand.u32 2147483647, %v269_v25  ;;  %226 = vadd.xlane.f32.xlu2 %v225_v26 }
  0xae   :  { %v278_v34 = vmul.f32 %v276_v28, %v660_v32  ;;  %v279_v35 = vmul.f32 %v277_v29, %v662_v33  ;;  %v272_v36 = vmul.f32 %v270_v30, %v149_v44 }
  0xaf   :  { %v273_v37 = vmul.f32 %v271_v31, %v150_v50 }
  0xb0   :  { %v280_v38 = vadd.f32 %v278_v34, %v272_v36 }
  0xb1   :  { %v281_v39 = vadd.f32 %v279_v35, %v273_v37 }
  0xb3   :  { %v282_v40 = vadd.f32 %v281_v39, %v280_v38 }
  0xb5   :  { %283 = vadd.xlane.f32.xlu1 %v282_v40 }
  0xd3   :  { %v123_v41 = vpop.xlane.xlu0 %122  ;;  %v192_v43 = vpop.xlane.xlu2 %191 }
  0xd4   :  { %v124_v11 = vrot.slane %v123_v41, 4  ;;  %v193_v46 = vrot.slane %v192_v43, 4 }
  0xd6   :  { %v125_v42 = vadd.f32 %v124_v11, %v123_v41  ;;  %v194_v48 = vadd.f32 %v193_v46, %v192_v43 }
  0xd8   :  { %v126_v13 = vrot.slane %v125_v42, 2  ;;  %v195_v32 = vrot.slane %v194_v48, 2 }
  0xda   :  { %v127_v45 = vadd.f32 %v126_v13, %v125_v42  ;;  %v196_v50 = vadd.f32 %v195_v32, %v194_v48 }
  0xdb   :  { %v249_v49 = vpop.xlane.xlu0 %248 }
  0xdc   :  { %v128_v47 = vrot.slane %v127_v45, 1  ;;  %v250_v51 = vrot.slane %v249_v49, 4  ;;  %v197_v55 = vrot.slane %v196_v50, 1 }
  0xde   :  { %v251_v33 = vadd.f32 %v250_v51, %v249_v49  ;;  %v129_v44 = vadd.f32 %v128_v47, %v127_v45  ;;  %v198_v58 = vadd.f32 %v197_v55, %v196_v50 }
  0xe0   :  { %v252_v54 = vrot.slane %v251_v33, 2  ;;  %v180_v57 = vmul.f32 %v337_v53, %v129_v44  ;;  %v237_v61 = vmul.f32 %v338_v60, %v198_v58 }
  0xe2   :  { %v253_v56 = vadd.f32 %v252_v54, %v251_v33  ;;  %v238_v0 = vadd.f32 %v237_v61, %v180_v57 }
  0xe4   :  { %v254_v59 = vrot.slane %v253_v56, 1 }
  0xe6   :  { %v255_v63 = vadd.f32 %v254_v59, %v253_v56 }
  0xe8   :  { %v294_v1 = vmul.f32 %v339_v62, %v255_v63 }
  0xea   :  { %v295_v2 = vadd.f32 %v294_v1, %v238_v0 }
  0xec   :  { %299 = vst.msk [vmem:[#allocation13] sm:$0x1] %vm298_vm5, %v295_v2 }
  0xed   :  { %311 = dma.vmem_to_hbm [thread:$0]  %s307_s28, 16, %s309_s8, [#allocation4]  }
 0x118   :  { %v170_v3 = vpop.xlane.xlu1 %169 }
 0x119   :  { %v171_v27 = vrot.slane %v170_v3, 4 }
 0x11b   :  { %v172_v5 = vadd.f32 %v171_v27, %v170_v3 }
 0x11d   :  { %v173_v8 = vrot.slane %v172_v5, 2 }
 0x11f   :  { %v174_v14 = vadd.f32 %v173_v8, %v172_v5 }
 0x120   :  { %v227_v6 = vpop.xlane.xlu2 %226 }
 0x121   :  { %v228_v7 = vrot.slane %v227_v6, 4  ;;  %v175_v19 = vrot.slane %v174_v14, 1 }
 0x123   :  { %v229_v10 = vadd.f32 %v228_v7, %v227_v6  ;;  %v176_v21 = vadd.f32 %v175_v19, %v174_v14 }
 0x125   :  { %v230_v12 = vrot.slane %v229_v10, 2  ;;  %v182_v25 = vmul.f32 %v337_v53, %v176_v21 }
 0x127   :  { %v231_v15 = vadd.f32 %v230_v12, %v229_v10 }
 0x128   :  { %v284_v16 = vpop.xlane.xlu1 %283 }
 0x129   :  { %v232_v17 = vrot.slane %v231_v15, 1  ;;  %v285_v18 = vrot.slane %v284_v16, 4 }
 0x12b   :  { %v286_v4 = vadd.f32 %v285_v18, %v284_v16  ;;  %v233_v9 = vadd.f32 %v232_v17, %v231_v15 }
 0x12d   :  { %v287_v20 = vrot.slane %v286_v4, 2  ;;  %v239_v23 = vmul.f32 %v338_v60, %v233_v9 }
 0x12f   :  { %v288_v22 = vadd.f32 %v287_v20, %v286_v4  ;;  %v240_v28 = vadd.f32 %v239_v23, %v182_v25 }
 0x131   :  { %v289_v24 = vrot.slane %v288_v22, 1 }
 0x133   :  { %v290_v26 = vadd.f32 %v289_v24, %v288_v22 }
 0x135   :  { %v296_v29 = vmul.f32 %v339_v62, %v290_v26 }
 0x137   :  { %v297_v30 = vadd.f32 %v296_v29, %v240_v28 }
 0x139   :  { %300 = vst.msk [vmem:[#allocation14] sm:$0x1] %vm298_vm5, %v297_v30 }
 0x13a   :  { %322 = dma.vmem_to_hbm [thread:$0]  %s318_s9, 16, %s320_s12, [#allocation15]  }
 0x13b   :  { %551 = dma.done.wait [#allocation4], 16  }
 0x13c   :  { %552 = vsyncadd [#allocation4], 4294967280 }
 0x13d   :  { %553 = dma.done.wait [#allocation15], 16  }
 0x13e   :  { %554 = vsyncadd [#allocation15], 4294967280 }
 0x13f   :  { %331 = vsyncpa [#allocation3], 1 }
 0x140   :  { %332 = vsyncpa [#allocation6], 1 }
 0x141   :  { %333 = vsyncpa [#allocation9], 1 }
 0x142   :  { %334 = vsyncpa [#allocation12], 1 }
 0x143   :  { %335 = vsyncpa [#allocation4], 1 }
 0x144   :  { %336 = vsyncpa [#allocation15], 1 }

</bundles_post_ra>
